<compile_context>
chip_gen: v7x
topology: tpu7x:2x2x1
jax: 0.10.0
libtpu: 0.0.40
codegen_flags: <defaults>
</compile_context>

<pallas_src>
import functools

import jax
import jax.numpy as jnp
from jax.experimental import pallas as pl
from jax.experimental.pallas import tpu as pltpu

# Candidate slab widths, widest first: large multiples of 128 for lane-dense,
# unmasked vector stores.
_WIDTH_CANDIDATES = (8192, 4096, 2048, 1024, 512, 256, 128)
_TARGET_BLOCK_BYTES = 8 * 1024 * 1024    # ~8 MiB per block
_VMEM_LIMIT_BYTES = 48 * 1024 * 1024     # 4 x 8 MiB double-buffered + headroom (< 64 MiB v7x VMEM)
_MIN_PALLAS_ELEMS = 1 << 18              # ~1 MiB of f32; below this plain XLA wins
_MIN_GRID_STEPS = 8                      # keep pipeline overlap + both v7x TCs busy


def _pick_compute_dtype(dtype):
    """Compute dtype: native bf16 on chips with bf16 VPU/EUP, else float32."""
    dtype = jnp.dtype(dtype)
    if dtype == jnp.dtype(jnp.float32):
        return jnp.float32
    if dtype == jnp.dtype(jnp.bfloat16):
        try:
            kind = jax.devices()[0].device_kind.lower()
        except Exception:  # pragma: no cover - defensive
            kind = ""
        # v6e / v7x have native bf16 VPU+EUP; v5-generation parts do not.
        if "v5" not in kind:
            return jnp.bfloat16
    return jnp.float32


def _silu_kernel(x_ref, o_ref, *, compute_dtype):
    x = x_ref[...].astype(compute_dtype)
    half = jnp.asarray(0.5, compute_dtype)
    one = jnp.asarray(1.0, compute_dtype)
    # silu(x) = x * sigmoid(x) = 0.5 * x * (1 + tanh(0.5 * x)):
    # one EUP transcendental (tanh); the rest is cheap VPU mul/add.
    o_ref[...] = (half * x * (one + jnp.tanh(half * x))).astype(o_ref.dtype)


def _run_2d(x2d: jnp.ndarray) -> jnp.ndarray:
    """Run the elementwise kernel over a (rows, width) slab, width % 128 == 0."""
    rows, width = x2d.shape
    elem_bytes = jnp.dtype(x2d.dtype).itemsize
    compute_dtype = _pick_compute_dtype(x2d.dtype)

    # Row tile: ~8 MiB blocks, multiple of 32 rows (legal for f32/bf16/int8/fp8
    # packings), but capped so the grid has >= _MIN_GRID_STEPS steps whenever
    # the slab is tall enough (pipeline overlap + megacore sharding on v7x).
    tile_from_bytes = max(32, (_TARGET_BLOCK_BYTES // (width * elem_bytes)) // 32 * 32)
    tile_from_steps = max(32, (rows // _MIN_GRID_STEPS) // 32 * 32)
    row_tile = min(tile_from_bytes, tile_from_steps)
    if row_tile >= rows:
        row_tile = rows  # small slab: single full-extent block (always legal)

    grid = (pl.cdiv(rows, row_tile),)  # ragged last row-block is masked by Pallas

    kernel = functools.partial(_silu_kernel, compute_dtype=compute_dtype)
    return pl.pallas_call(
        kernel,
        out_shape=jax.ShapeDtypeStruct((rows, width), x2d.dtype),
        grid=grid,
        in_specs=[pl.BlockSpec((row_tile, width), lambda i: (i, 0))],
        out_specs=pl.BlockSpec((row_tile, width), lambda i: (i, 0)),
        compiler_params=pltpu.CompilerParams(
            dimension_semantics=("parallel",),
            vmem_limit_bytes=_VMEM_LIMIT_BYTES,
        ),
    )(x2d)


def _glu_pallas(x: jnp.ndarray) -> jnp.ndarray:
    """Pallas path: x * sigmoid(x) for any float shape, lane-dense 2D slabs."""
    orig_shape = x.shape
    n = x.size
    if n == 0:
        return x

    flat = x.reshape(-1)  # free for contiguous arrays

    # Preferred path (no pad, no slice): widest lane-dense width dividing n,
    # preferring slabs with at least 8 rows (full sublane tiles).
    divisors = [w for w in _WIDTH_CANDIDATES if n % w == 0]
    if divisors:
        width = next((w for w in divisors if n // w >= 8), divisors[0])
        out = _run_2d(flat.reshape(n // width, width))
        return out.reshape(orig_shape)

    # Ragged element count (n % 128 != 0): run the kernel on the 128-aligned
    # prefix and let XLA handle the <128-element tail.  No padding, and no
    # sigmoid is ever computed on garbage/padded values.
    aligned = (n // 128) * 128
    if aligned == 0:
        return (x * jax.nn.sigmoid(x)).astype(x.dtype)
    a_divisors = [w for w in _WIDTH_CANDIDATES if aligned % w == 0]
    width = next((w for w in a_divisors if aligned // w >= 8), a_divisors[0])
    head = _run_2d(flat[:aligned].reshape(aligned // width, width)).reshape(-1)
    tail = flat[aligned:]
    tail = (tail * jax.nn.sigmoid(tail)).astype(x.dtype)
    return jnp.concatenate([head, tail]).reshape(orig_shape)


def glu(x: jnp.ndarray) -> jnp.ndarray:
    """Forward of the reference module: input * sigmoid(input) (SiLU/Swish)."""
    if not jnp.issubdtype(x.dtype, jnp.floating):
        # Non-float inputs: fall back to plain XLA (promotes like jnp would).
        return x * jax.nn.sigmoid(x)
    if x.size < _MIN_PALLAS_ELEMS:
        # Small input: one fused XLA elementwise op beats the custom-call trip.
        return x * jax.nn.sigmoid(x)
    return _glu_pallas(x)


if __name__ == "__main__":
    key = jax.random.PRNGKey(0)

    # NCHW feature map consistent with the discriminator usage (small shape).
    x = jax.random.normal(key, (2, 4, 16, 16), dtype=jnp.float32)
    y = _glu_pallas(x)  # exercise the Pallas kernel directly on the small input
    jax.block_until_ready(y)
    y_ref = x * jax.nn.sigmoid(x)
    assert y.shape == x.shape and y.dtype == x.dtype
    assert jnp.allclose(y, y_ref, atol=1e-5, rtol=1e-5)

    # Ragged element count -> exercises the aligned-prefix + XLA-tail path.
    x2 = jax.random.normal(jax.random.PRNGKey(0), (3, 5, 7, 11), dtype=jnp.float32)
    y2 = _glu_pallas(x2)
    jax.block_until_ready(y2)
    assert y2.shape == x2.shape and y2.dtype == x2.dtype
    assert jnp.allclose(y2, x2 * jax.nn.sigmoid(x2), atol=1e-5, rtol=1e-5)

    # Larger input -> public wrapper routes to Pallas with a multi-step grid
    # (double-buffered pipeline, "parallel" axis for v7x megacore).
    x3 = jax.random.normal(jax.random.PRNGKey(0), (8, 64, 64, 64), dtype=jnp.float32)
    y3 = glu(x3)
    jax.block_until_ready(y3)
    assert jnp.allclose(y3, x3 * jax.nn.sigmoid(x3), atol=1e-5, rtol=1e-5)

    # Public wrapper on the tiny input (routes to XLA) matches as well.
    y4 = glu(x)
    jax.block_until_ready(y4)
    assert jnp.allclose(y4, y_ref, atol=1e-5, rtol=1e-5)

    print("KERNEL_OK")
</pallas_src>

<mosaic_0001>
module attributes {stable_mosaic.version = 11 : i64} {
  func.func @_silu_kernel(%arg0: i32, %arg1: memref<8x256xf32, #tpu.memory_space<vmem>>, %arg2: memref<8x256xf32, #tpu.memory_space<vmem>>) attributes {dimension_semantics = [#tpu.dimension_semantics<parallel>], iteration_bounds = array<i64: 1>, scalar_prefetch = 0 : i64, scratch_operands = 0 : i64, tpu.core_type = #tpu.core_type<tc>, window_params = [{transform_indices = @transform_0, window_bounds = array<i64: 8, 256>}, {transform_indices = @transform_1, window_bounds = array<i64: 8, 256>}]} {
    %c0 = arith.constant 0 : index
    %c0_0 = arith.constant 0 : index
    %0 = vector.load %arg1[%c0, %c0_0] : memref<8x256xf32, #tpu.memory_space<vmem>>, vector<8x256xf32>
    %cst = arith.constant 5.000000e-01 : f32
    %1 = vector.broadcast %cst : f32 to vector<8x256xf32>
    %2 = arith.mulf %1, %0 : vector<8x256xf32>
    %cst_1 = arith.constant 5.000000e-01 : f32
    %3 = vector.broadcast %cst_1 : f32 to vector<8x256xf32>
    %4 = arith.mulf %3, %0 : vector<8x256xf32>
    %5 = math.tanh %4 : vector<8x256xf32>
    %cst_2 = arith.constant 1.000000e+00 : f32
    %6 = vector.broadcast %cst_2 : f32 to vector<8x256xf32>
    %7 = arith.addf %6, %5 : vector<8x256xf32>
    %8 = arith.mulf %2, %7 : vector<8x256xf32>
    %c0_3 = arith.constant 0 : index
    %c0_4 = arith.constant 0 : index
    %9 = vector.load %arg2[%c0_3, %c0_4] : memref<8x256xf32, #tpu.memory_space<vmem>>, vector<8x256xf32>
    tpu.vector_store %arg2[%c0_3, %c0_4], %8 {strides = array<i32>} : memref<8x256xf32, #tpu.memory_space<vmem>>, vector<8x256xf32>,
    return
  }
  func.func @transform_0(%arg0: i32) -> (i32, i32) {
    %c0_i32 = arith.constant 0 : i32
    %c0_i32_0 = arith.constant 0 : i32
    return %arg0, %c0_i32 : i32, i32
  }
  func.func @transform_1(%arg0: i32) -> (i32, i32) {
    %c0_i32 = arith.constant 0 : i32
    %c0_i32_0 = arith.constant 0 : i32
    return %arg0, %c0_i32 : i32, i32
  }
}

</mosaic_0001>

<bundles_post_ra>
// kernel: tpu_custom_call.1
= control target key start
LH: loop header
LB: loop body
LE: loop exit
PB: predicated region body
PF: predicated region fallthrough
CT: control target
= control target key end

     0   :  { %6 = vsyncpa [#allocation3], 0  ;;  %s138_s0 = inlined_call_operand.hbm [shape: f32[8,256], index: 0, kind: input, shape index: {}]   ;;  %s139_s1 = inlined_call_operand.hbm [shape: f32[8,256], index: 1, kind: output, shape index: {}]  }
   0x1   :  { %7 = vsyncpa [#allocation4], 0  ;;  %s102_s6 = smov [#allocation2]   ;;  %s54_s10 = scalar_lea.hbm %s138_s0, 256 }
   0x2   :  { %s14_s7 = sshll.u32 %s102_s6, 4  ;;  %p55_p0 = scmp.ne.s32.totalorder %s138_s0, %s54_s10  ;;  %s15_s7 = int_to_ptr.vmem [resolvable:$true] %s14_s7 }
   0x3   :  { %p58_p1 = scmp.lt.u32.totalorder %s54_s10, %s138_s0 }
   0x5   :  { %p60_p2 = pnand %p58_p1, %p55_p0 }
   0x7   :  { %63 = shalt.err (!%p60_p2)
}
   0x8   :  { %s64_s15 = scalar_lea.vmem %s15_s7, 256  ;;  %p69_p4 = scmp.lt.s32.totalorder %s15_s7, %s15_s7 }
   0x9   :  { %p65_p3 = scmp.ne.s32.totalorder %s15_s7, %s64_s15  ;;  %p70_p5 = scmp.lt.s32.totalorder %s64_s15, %s64_s15 }
   0xb   :  { %p71_p6 = por %p70_p5, %p69_p4 }
   0xd   :  { %p72_p7 = pnand %p71_p6, %p65_p3 }
   0xf   :  { %75 = shalt.err (!%p72_p7)
}
  0x10   :  { %17 = dma.hbm_to_vmem [thread:$0]  %s138_s0, 256, %s15_s7, [#allocation3]  }
  0x11   :  { %98 = dma.done.wait [#allocation3], 256  }
  0x12   :  { %99 = vsyncadd [#allocation3], 4294967040  ;;  %v21_v0 = vld [vmem:[#allocation2] sm:$0xff]  ;;  %v22_v1 = vld [vmem:[#allocation2 + $0x8] sm:$0xff]  ;;  %s103_s18 = smov [#allocation5]  }
  0x13   :  { %v23_v2 = vmul.f32 0.5, %v21_v0  ;;  %v24_v3 = vmul.f32 0.5, %v22_v1  ;;  %s39_s19 = sshll.u32 %s103_s18, 4  ;;  %s40_s19 = int_to_ptr.vmem [resolvable:$true] %s39_s19 }
  0x14   :  { %s76_s0 = scalar_lea.vmem %s40_s19, 256  ;;  %p81_p9 = scmp.lt.s32.totalorder %s40_s19, %s40_s19 }
  0x15   :  { %50 = vtanh.f32 %v23_v2  ;;  %p77_p8 = scmp.ne.s32.totalorder %s40_s19, %s76_s0  ;;  %p82_p10 = scmp.lt.s32.totalorder %s76_s0, %s76_s0 }
  0x16   :  { %52 = vtanh.f32 %v24_v3 }
  0x17   :  { %p83_p11 = por %p82_p10, %p81_p9 }
  0x19   :  { %p84_p12 = pnand %p83_p11, %p77_p8 }
  0x1f   :  { %v51_v4 = vpop.eup %50 }
  0x20   :  { %v53_v5 = vpop.eup %52  ;;  %v27_v6 = vadd.f32 1.0, %v51_v4 }
  0x21   :  { %v28_v7 = vadd.f32 1.0, %v53_v5 }
  0x22   :  { %v29_v8 = vmul.f32 %v27_v6, %v23_v2 }
  0x23   :  { %v30_v9 = vmul.f32 %v28_v7, %v24_v3 }
  0x24   :  { %31 = vst [vmem:[#allocation5] sm:$0xff] %v29_v8 }
  0x25   :  { %32 = vst [vmem:[#allocation5 + $0x8] sm:$0xff] %v30_v9 }
  0x26   :  { %87 = shalt.err (!%p84_p12)
}
  0x27   :  { %s88_s22 = scalar_lea.hbm %s139_s1, 256 }
  0x28   :  { %p89_p13 = scmp.ne.s32.totalorder %s139_s1, %s88_s22  ;;  %p92_p0 = scmp.lt.u32.totalorder %s88_s22, %s139_s1 }
  0x2a   :  { %p94_p1 = pnand %p92_p0, %p89_p13 }
  0x2c   :  { %97 = shalt.err (!%p94_p1)
}
  0x2d   :  { %42 = dma.vmem_to_hbm [thread:$0]  %s40_s19, 256, %s139_s1, [#allocation4]  }
  0x2e   :  { %100 = dma.done.wait [#allocation4], 256  }
  0x2f   :  { %101 = vsyncadd [#allocation4], 4294967040 }
  0x30   :  { %46 = vsyncpa [#allocation3], 1 }
  0x31   :  { %47 = vsyncpa [#allocation4], 1 }

</bundles_post_ra>
